<compile_context>
chip_gen: v6e
topology: v6e:2x2x1
jax: 0.10.0
libtpu: 0.0.40
codegen_flags: <defaults>
</compile_context>

<pallas_src>
import functools

import numpy as np
import jax
import jax.numpy as jnp
from jax import lax
from jax.experimental import pallas as pl
from jax.experimental.pallas import tpu as pltpu

# ---- configuration (mirrors S3IM.__init__ defaults; patch height scaled down) ----
S3IM_KERNEL_SIZE = 4
S3IM_STRIDE = 4
S3IM_REPEAT_TIME = 10
S3IM_PATCH_HEIGHT = 16      # module default is 64; small demo size
_C1 = 0.01 ** 2
_C2 = 0.03 ** 2

_NUM_STATS = 5              # x, y, x*x, y*y, x*y
_NUM_CH = 3


# ----------------------------- constant builders ---------------------------------
def gaussian_1d(ksize: int, sigma: float) -> np.ndarray:
    g = np.array(
        [np.exp(-((x - ksize // 2) ** 2) / (2.0 * sigma ** 2)) for x in range(ksize)],
        dtype=np.float64,
    )
    return (g / g.sum()).astype(np.float32)


def conv_matrices(H, W, ksize, stride):
    """Build R (H_out, H) and C (W, W_out) so that R @ X @ C == depthwise Gaussian
    conv2d(X) with the given stride and padding=(ksize-1)//2 (zero padding)."""
    pad = (ksize - 1) // 2
    g = gaussian_1d(ksize, 1.5)
    H_out = (H + 2 * pad - ksize) // stride + 1
    W_out = (W + 2 * pad - ksize) // stride + 1
    R = np.zeros((H_out, H), np.float32)
    for i in range(H_out):
        for dy in range(ksize):
            h = i * stride - pad + dy
            if 0 <= h < H:
                R[i, h] += g[dy]
    C = np.zeros((W, W_out), np.float32)
    for j in range(W_out):
        for dx in range(ksize):
            w = j * stride - pad + dx
            if 0 <= w < W:
                C[w, j] += g[dx]
    return R, C, H_out, W_out


def block_diag_np(M: np.ndarray, n: int) -> np.ndarray:
    r, c = M.shape
    out = np.zeros((n * r, n * c), np.float32)
    for i in range(n):
        out[i * r:(i + 1) * r, i * c:(i + 1) * c] = M
    return out


# ----------------------------- Pallas kernel ------------------------------------
def s3im_ssim_kernel(img1_ref, img2_ref, r5_ref, c3_ref, out_ref):
    # img refs: (H, 3*W) lane-dense, channel-blocked along lanes.
    x = img1_ref[...]
    y = img2_ref[...]

    # Stack all conv operands along the sublane axis: (5H, 3W).
    z = jnp.concatenate([x, y, x * x, y * y, x * y], axis=0)

    # Two fused MXU matmuls replace 3 channels x 6 convs x 2 matmuls = 36 matmuls.
    t = jnp.dot(r5_ref[...], z, preferred_element_type=jnp.float32)   # (5*H_out, 3W)
    s = jnp.dot(t, c3_ref[...], preferred_element_type=jnp.float32)   # (5*H_out, 3*W_out)

    h_out = r5_ref.shape[0] // _NUM_STATS
    mu1 = s[0 * h_out:1 * h_out, :]
    mu2 = s[1 * h_out:2 * h_out, :]
    e_xx = s[2 * h_out:3 * h_out, :]
    e_yy = s[3 * h_out:4 * h_out, :]
    e_xy = s[4 * h_out:5 * h_out, :]

    mu1_sq = mu1 * mu1
    mu2_sq = mu2 * mu2
    mu1_mu2 = mu1 * mu2
    sigma1_sq = e_xx - mu1_sq
    sigma2_sq = e_yy - mu2_sq
    sigma12 = e_xy - mu1_mu2

    ssim_map = ((2.0 * mu1_mu2 + _C1) * (2.0 * sigma12 + _C2)) / (
        (mu1_sq + mu2_sq + _C1) * (sigma1_sq + sigma2_sq + _C2)
    )

    # Single cross-lane reduction + scalar finalize.
    count = float(ssim_map.shape[0] * ssim_map.shape[1])
    out_ref[0, 0] = 1.0 - jnp.sum(ssim_map) / count


# ----------------------------- wrapper (glue) ------------------------------------
def _make_res_index(key, n):
    """torch: [arange(n)] + (repeat-1) x randperm(n), concatenated (batched here)."""
    keys = jax.random.split(key, S3IM_REPEAT_TIME - 1)
    perms = jax.vmap(lambda k: jax.random.permutation(k, n))(keys)        # (r-1, n)
    first = jnp.arange(n, dtype=perms.dtype)[None, :]
    return jnp.concatenate([first, perms], axis=0).reshape(-1)            # (n*r,)


def _to_lane_dense(v_all, H, W):
    """(N*repeat, 3) ray colors -> (H, 3*W), channel-blocked along the lane axis.
    Matches torch's permute(1,0).reshape(3, H, W) per-channel images."""
    return (
        v_all.reshape(H, W, _NUM_CH)
        .transpose(0, 2, 1)
        .reshape(H, _NUM_CH * W)
        .astype(jnp.float32)
    )


@jax.jit
def s3im_loss_pallas(src_vec, tar_vec, key):
    """src_vec, tar_vec: (N, 3) ray colors. Returns scalar loss = 1 - SSIM."""
    N = tar_vec.shape[0]
    total = N * S3IM_REPEAT_TIME
    if total % S3IM_PATCH_HEIGHT != 0:
        raise ValueError(
            f"N * repeat_time ({total}) must be divisible by patch_height "
            f"({S3IM_PATCH_HEIGHT})"
        )
    H = S3IM_PATCH_HEIGHT
    W = total // H

    res_index = _make_res_index(key, N)
    tar_all = jnp.take(tar_vec, res_index, axis=0)     # (N*repeat, 3)
    src_all = jnp.take(src_vec, res_index, axis=0)

    src_laned = _to_lane_dense(src_all, H, W)           # (H, 3W)
    tar_laned = _to_lane_dense(tar_all, H, W)

    # Compile-time separable-conv constants, block-diagonalized for the fused matmuls.
    R, C, H_out, W_out = conv_matrices(H, W, S3IM_KERNEL_SIZE, S3IM_STRIDE)
    R5 = jnp.asarray(block_diag_np(R, _NUM_STATS))      # (5*H_out, 5*H)
    C3 = jnp.asarray(block_diag_np(C, _NUM_CH))         # (3*W, 3*W_out)

    out = pl.pallas_call(
        s3im_ssim_kernel,
        out_shape=jax.ShapeDtypeStruct((1, 1), jnp.float32),
        in_specs=[pl.BlockSpec(memory_space=pltpu.MemorySpace.VMEM)] * 4,
        out_specs=pl.BlockSpec(memory_space=pltpu.MemorySpace.SMEM),
    )(src_laned, tar_laned, R5, C3)
    # TODO(synk): at production patch sizes add a stride-aligned, 128-lane-multiple
    # grid over W (parallel dimension_semantics) instead of whole-image VMEM residency.
    return out[0, 0]


# ----------------------------- pure-JAX reference --------------------------------
def _ref_ssim_loss(img1, img2, ksize, stride):
    """Reference using lax.conv (depthwise), img: (C, H, W)."""
    ch = img1.shape[0]
    g = gaussian_1d(ksize, 1.5)
    k2 = np.outer(g, g).astype(np.float32)
    kernel = jnp.asarray(np.tile(k2[None, None], (ch, 1, 1, 1)))   # (C,1,k,k)
    pad = (ksize - 1) // 2

    def conv(x):
        return lax.conv_general_dilated(
            x[None], kernel, window_strides=(stride, stride),
            padding=[(pad, pad), (pad, pad)],
            dimension_numbers=("NCHW", "OIHW", "NCHW"),
            feature_group_count=ch)[0]

    mu1, mu2 = conv(img1), conv(img2)
    mu1_sq, mu2_sq, mu1_mu2 = mu1 * mu1, mu2 * mu2, mu1 * mu2
    s1 = conv(img1 * img1) - mu1_sq
    s2 = conv(img2 * img2) - mu2_sq
    s12 = conv(img1 * img2) - mu1_mu2
    ssim_map = ((2 * mu1_mu2 + _C1) * (2 * s12 + _C2)) / (
        (mu1_sq + mu2_sq + _C1) * (s1 + s2 + _C2))
    return 1.0 - jnp.mean(ssim_map)


if __name__ == "__main__":
    key = jax.random.PRNGKey(0)
    k_src, k_tar, k_perm = jax.random.split(key, 3)

    N = 64  # number of rays; N * repeat_time must be divisible by patch_height
    src_vec = jax.random.uniform(k_src, (N, 3), dtype=jnp.float32)
    tar_vec = jax.random.uniform(k_tar, (N, 3), dtype=jnp.float32)

    loss = jax.block_until_ready(s3im_loss_pallas(src_vec, tar_vec, k_perm))

    # reference check (same permutation construction, pure-JAX conv path, CHW layout)
    res_index = _make_res_index(k_perm, N)
    tar_patch = jnp.take(tar_vec, res_index, axis=0).T.reshape(3, S3IM_PATCH_HEIGHT, -1)
    src_patch = jnp.take(src_vec, res_index, axis=0).T.reshape(3, S3IM_PATCH_HEIGHT, -1)
    ref = jax.block_until_ready(
        _ref_ssim_loss(src_patch.astype(jnp.float32), tar_patch.astype(jnp.float32),
                       S3IM_KERNEL_SIZE, S3IM_STRIDE))

    assert np.isfinite(float(loss))
    np.testing.assert_allclose(float(loss), float(ref), rtol=1e-4, atol=1e-5)
    print("KERNEL_OK")
</pallas_src>

<mosaic_0001>
module attributes {stable_mosaic.version = 11 : i64} {
  func.func @s3im_ssim_kernel(%arg0: memref<16x120xf32, #tpu.memory_space<vmem>>, %arg1: memref<16x120xf32, #tpu.memory_space<vmem>>, %arg2: memref<20x80xf32, #tpu.memory_space<vmem>>, %arg3: memref<120x30xf32, #tpu.memory_space<vmem>>, %arg4: memref<1x1xf32, #tpu.memory_space<smem>>) attributes {dimension_semantics = [], scalar_prefetch = 0 : i64, scratch_operands = 0 : i64, tpu.core_type = #tpu.core_type<tc>} {
    %c0 = arith.constant 0 : index
    %c0_0 = arith.constant 0 : index
    %0 = vector.load %arg0[%c0, %c0_0] : memref<16x120xf32, #tpu.memory_space<vmem>>, vector<16x120xf32>
    %c0_1 = arith.constant 0 : index
    %c0_2 = arith.constant 0 : index
    %1 = vector.load %arg1[%c0_1, %c0_2] : memref<16x120xf32, #tpu.memory_space<vmem>>, vector<16x120xf32>
    %2 = arith.mulf %0, %0 : vector<16x120xf32>
    %3 = arith.mulf %1, %1 : vector<16x120xf32>
    %4 = arith.mulf %0, %1 : vector<16x120xf32>
    %5 = tpu.concatenate %0, %1, %2, %3, %4 in 0 : vector<16x120xf32>, vector<16x120xf32>, vector<16x120xf32>, vector<16x120xf32>, vector<16x120xf32> -> vector<80x120xf32>
    %c0_3 = arith.constant 0 : index
    %c0_4 = arith.constant 0 : index
    %6 = vector.load %arg2[%c0_3, %c0_4] : memref<20x80xf32, #tpu.memory_space<vmem>>, vector<20x80xf32>
    %cst = arith.constant dense<0.000000e+00> : vector<20x120xf32>
    %7 = tpu.matmul %6, %5, %cst {dimension_numbers = #tpu.dot_dimension_numbers<[1], [0], [0], [1], [0, 0, 1, 1], [], []>} : vector<20x80xf32>, vector<80x120xf32>, vector<20x120xf32> -> vector<20x120xf32>
    %c0_5 = arith.constant 0 : index
    %c0_6 = arith.constant 0 : index
    %8 = vector.load %arg3[%c0_5, %c0_6] : memref<120x30xf32, #tpu.memory_space<vmem>>, vector<120x30xf32>
    %cst_7 = arith.constant dense<0.000000e+00> : vector<20x30xf32>
    %9 = tpu.matmul %7, %8, %cst_7 {dimension_numbers = #tpu.dot_dimension_numbers<[1], [0], [0], [1], [0, 0, 1, 1], [], []>} : vector<20x120xf32>, vector<120x30xf32>, vector<20x30xf32> -> vector<20x30xf32>
    %10 = vector.extract_strided_slice %9 {offsets = [0, 0], sizes = [4, 30], strides = [1, 1]} : vector<20x30xf32> to vector<4x30xf32>
    %11 = vector.extract_strided_slice %9 {offsets = [4, 0], sizes = [4, 30], strides = [1, 1]} : vector<20x30xf32> to vector<4x30xf32>
    %12 = vector.extract_strided_slice %9 {offsets = [8, 0], sizes = [4, 30], strides = [1, 1]} : vector<20x30xf32> to vector<4x30xf32>
    %13 = vector.extract_strided_slice %9 {offsets = [12, 0], sizes = [4, 30], strides = [1, 1]} : vector<20x30xf32> to vector<4x30xf32>
    %14 = vector.extract_strided_slice %9 {offsets = [16, 0], sizes = [4, 30], strides = [1, 1]} : vector<20x30xf32> to vector<4x30xf32>
    %15 = arith.mulf %10, %10 : vector<4x30xf32>
    %16 = arith.mulf %11, %11 : vector<4x30xf32>
    %17 = arith.mulf %10, %11 : vector<4x30xf32>
    %18 = arith.subf %12, %15 : vector<4x30xf32>
    %19 = arith.subf %13, %16 : vector<4x30xf32>
    %20 = arith.subf %14, %17 : vector<4x30xf32>
    %cst_8 = arith.constant 2.000000e+00 : f32
    %21 = vector.broadcast %cst_8 : f32 to vector<4x30xf32>
    %22 = arith.mulf %21, %17 : vector<4x30xf32>
    %cst_9 = arith.constant 9.99999974E-5 : f32
    %23 = vector.broadcast %cst_9 : f32 to vector<4x30xf32>
    %24 = arith.addf %22, %23 : vector<4x30xf32>
    %cst_10 = arith.constant 2.000000e+00 : f32
    %25 = vector.broadcast %cst_10 : f32 to vector<4x30xf32>
    %26 = arith.mulf %25, %20 : vector<4x30xf32>
    %cst_11 = arith.constant 8.99999984E-4 : f32
    %27 = vector.broadcast %cst_11 : f32 to vector<4x30xf32>
    %28 = arith.addf %26, %27 : vector<4x30xf32>
    %29 = arith.mulf %24, %28 : vector<4x30xf32>
    %30 = arith.addf %15, %16 : vector<4x30xf32>
    %cst_12 = arith.constant 9.99999974E-5 : f32
    %31 = vector.broadcast %cst_12 : f32 to vector<4x30xf32>
    %32 = arith.addf %30, %31 : vector<4x30xf32>
    %33 = arith.addf %18, %19 : vector<4x30xf32>
    %cst_13 = arith.constant 8.99999984E-4 : f32
    %34 = vector.broadcast %cst_13 : f32 to vector<4x30xf32>
    %35 = arith.addf %33, %34 : vector<4x30xf32>
    %36 = arith.mulf %32, %35 : vector<4x30xf32>
    %37 = arith.divf %29, %36 : vector<4x30xf32>
    %38 = vector.shape_cast %37 : vector<4x30xf32> to vector<1x4x30xf32>
    %cst_14 = arith.constant dense<0.000000e+00> : vector<1xf32>
    %39 = vector.multi_reduction <add>, %38, %cst_14 [1, 2] : vector<1x4x30xf32> to vector<1xf32>
    %40 = vector.shape_cast %39 : vector<1xf32> to vector<1x1x1xf32>
    %41 = vector.extract %40[0, 0, 0] : f32 from vector<1x1x1xf32>
    %cst_15 = arith.constant 1.200000e+02 : f32
    %42 = arith.divf %41, %cst_15 : f32
    %cst_16 = arith.constant 1.000000e+00 : f32
    %43 = arith.subf %cst_16, %42 : f32
    %c0_17 = arith.constant 0 : index
    %c0_18 = arith.constant 0 : index
    %44 = memref.load %arg4[%c0_17, %c0_18] : memref<1x1xf32, #tpu.memory_space<smem>>
    memref.store %43, %arg4[%c0_17, %c0_18] : memref<1x1xf32, #tpu.memory_space<smem>>
    return
  }
}

</mosaic_0001>

<bundles_post_ra>
// kernel: s3im_loss_pallas.1
= control target key start
LH: loop header
LB: loop body
LE: loop exit
PB: predicated region body
PF: predicated region fallthrough
CT: control target
= control target key end

     0   :  { %v403_v3 = vmov 0.0   ;;  %vm404_vm0 = vmmov 0   ;;  %s540_s0 = inlined_call_operand.vmem [shape: f32[16,120], index: 0, kind: input, shape index: {}]   ;;  %s541_s1 = inlined_call_operand.vmem [shape: f32[16,120], index: 1, kind: input, shape index: {}]   ;;  %s542_s2 = inlined_call_operand.vmem [shape: f32[20,80], index: 2, kind: input, shape index: {}]   ;;  %s543_s3 = inlined_call_operand.vmem [shape: f32[120,30], index: 3, kind: input, shape index: {}]   ;;  %s544_s4 = inlined_call_operand.hbm [shape: f32[1,1], index: 4, kind: output, shape index: {}]  }
   0x1   :  { %v19_v0 = vld [vmem:[%s540_s0 + $0x8] sm:$0xff]  ;;  %v18_v2 = vld [vmem:[%s540_s0] sm:$0xff]  ;;  %318 = vmatprep.subr.mxu0 %v403_v3  ;;  %338 = vmatprep.mubr.msk.f32.mxu0 %vm404_vm0, %v403_v3  ;;  %v135_v7 = vld [vmem:[%s543_s3 + $0x70] sm:$0xff] }
   0x2   :  { %v21_v1 = vld [vmem:[%s541_s1 + $0x8] sm:$0xff]  ;;  %v20_v5 = vld [vmem:[%s541_s1] sm:$0xff]  ;;  %347 = vmatprep.subr.mxu1 %v403_v3  ;;  %v132_v12 = vld [vmem:[%s543_s3 + $0x58] sm:$0xff]  ;;  %v23_v13 = vmul.f32 %v19_v0, %v19_v0 }
   0x3   :  { %v27_v4 = vmul.f32 %v21_v1, %v19_v0  ;;  %v26_v6 = vmul.f32 %v20_v5, %v18_v2  ;;  %v134_v8 = vld [vmem:[%s543_s3 + $0x68] sm:$0xff]  ;;  %v25_v9 = vmul.f32 %v21_v1, %v21_v1  ;;  %348 = vmatpush3.msra.mxu1 %v135_v7  ;;  %v133_v10 = vld [vmem:[%s543_s3 + $0x60] sm:$0xff]  ;;  %v24_v11 = vmul.f32 %v20_v5, %v20_v5 }
   0x4   :  { %349 = vmatprep.subr.mxu1 %v403_v3 }
   0x5   :  { %319 = vmatpush3.msra.mxu0 %v27_v4  ;;  %350 = vmatpush3.msra.mxu1 %v134_v8 }
   0x6   :  { %320 = vmatprep.subr.mxu0 %v403_v3  ;;  %351 = vmatprep.subr.mxu1 %v403_v3 }
   0x7   :  { %321 = vmatpush3.msra.mxu0 %v26_v6  ;;  %352 = vmatpush3.msra.mxu1 %v133_v10 }
   0x8   :  { %322 = vmatprep.subr.mxu0 %v403_v3 }
   0x9   :  { %323 = vmatpush3.msra.mxu0 %v25_v9 }
   0xa   :  { %9 = vsyncpa [#allocation3], 0  ;;  %324 = vmatprep.subr.mxu0 %v403_v3  ;;  %353 = vmatprep.subr.mxu1 %v403_v3  ;;  %v131_v14 = vld [vmem:[%s543_s3 + $0x50] sm:$0xff]  ;;  %v22_v15 = vmul.f32 %v18_v2, %v18_v2  ;;  %v130_v16 = vld [vmem:[%s543_s3 + $0x48] sm:$0xff]  ;;  %vm31_vm1 = vcmask 654336   ;;  %vm136_vm2 = vcmask 982016  }
   0xb   :  { %325 = vmatpush3.msra.mxu0 %v24_v11  ;;  %354 = vmatpush3.msra.mxu1 %v132_v12  ;;  %v129_v17 = vld [vmem:[%s543_s3 + $0x40] sm:$0xff]  ;;  %v128_v18 = vld [vmem:[%s543_s3 + $0x38] sm:$0xff]  ;;  %v127_v19 = vld [vmem:[%s543_s3 + $0x30] sm:$0xff]  ;;  %vm251_vm3 = vcmask 240640   ;;  %s405_s30 = smov [#allocation2]  }
   0xc   :  { %326 = vmatprep.subr.mxu0 %v403_v3  ;;  %355 = vmatprep.subr.mxu1 %v403_v3  ;;  %v126_v20 = vld [vmem:[%s543_s3 + $0x28] sm:$0xff]  ;;  %v28_v21 = vld [vmem:[%s542_s2] sm:$0xff]  ;;  %v124_v23 = vld [vmem:[%s543_s3 + $0x18] sm:$0xff] }
   0xd   :  { %327 = vmatpush3.msra.mxu0 %v23_v13  ;;  %356 = vmatpush3.msra.mxu1 %v131_v14  ;;  %v125_v22 = vld [vmem:[%s543_s3 + $0x20] sm:$0xff]  ;;  %v29_v24 = vld [vmem:[%s542_s2 + $0x8] sm:$0xff]  ;;  %v123_v25 = vld [vmem:[%s543_s3 + $0x10] sm:$0xff] }
   0xe   :  { %328 = vmatprep.subr.mxu0 %v403_v3  ;;  %357 = vmatprep.subr.mxu1 %v403_v3  ;;  %v122_v26 = vld [vmem:[%s543_s3 + $0x8] sm:$0xff]  ;;  %v30_v27 = vld [vmem:[%s542_s2 + $0x10] sm:$0xf]  ;;  %v121_v28 = vld [vmem:[%s543_s3] sm:$0xff] }
   0xf   :  { %329 = vmatpush3.msra.mxu0 %v22_v15  ;;  %358 = vmatpush3.msra.mxu1 %v130_v16 }
  0x10   :  { %330 = vmatprep.subr.mxu0 %v403_v3  ;;  %359 = vmatprep.subr.mxu1 %v403_v3 }
  0x11   :  { %331 = vmatpush3.msra.mxu0 %v21_v1  ;;  %360 = vmatpush3.msra.mxu1 %v129_v17 }
  0x12   :  { %332 = vmatprep.subr.mxu0 %v403_v3  ;;  %361 = vmatprep.subr.mxu1 %v403_v3 }
  0x13   :  { %333 = vmatpush3.msra.mxu0 %v20_v5  ;;  %362 = vmatpush3.msra.mxu1 %v128_v18 }
  0x14   :  { %334 = vmatprep.subr.mxu0 %v403_v3  ;;  %363 = vmatprep.subr.mxu1 %v403_v3 }
  0x15   :  { %335 = vmatpush3.msra.mxu0 %v19_v0  ;;  %364 = vmatpush3.msra.mxu1 %v127_v19 }
  0x16   :  { %336 = vmatprep.subr.mxu0 %v403_v3  ;;  %365 = vmatprep.subr.mxu1 %v403_v3 }
  0x17   :  { %337 = vmatpush3.msra.mxu0 %v18_v2  ;;  %366 = vmatpush3.msra.mxu1 %v126_v20 }
  0x18   :  { %339 = vmatmul.mubr.msk.f32.vlgmr.msra.gmra.mxu0 %vm31_vm1, %v28_v21  ;;  %367 = vmatprep.subr.mxu1 %v403_v3 }
  0x19   :  { %341 = vmatprep.mubr.msk.f32.mxu0 %vm404_vm0, %v403_v3  ;;  %368 = vmatpush3.msra.mxu1 %v125_v22 }
  0x1a   :  { %369 = vmatprep.subr.mxu1 %v403_v3  ;;  %377 = vmatprep.mubr.msk.f32.mxu1 %vm404_vm0, %v403_v3 }
  0x1b   :  { %370 = vmatpush3.msra.mxu1 %v124_v23 }
  0x1c   :  { %342 = vmatmul.mubr.msk.f32.gmra.mxu0 %vm31_vm1, %v29_v24  ;;  %371 = vmatprep.subr.mxu1 %v403_v3 }
  0x1d   :  { %344 = vmatprep.mubr.msk.f32.mxu0 %vm404_vm0, %v403_v3  ;;  %372 = vmatpush3.msra.mxu1 %v123_v25 }
  0x1e   :  { %373 = vmatprep.subr.mxu1 %v403_v3 }
  0x1f   :  { %374 = vmatpush3.msra.mxu1 %v122_v26 }
  0x20   :  { %345 = vmatmul.mubr.msk.f32.gmra.mxu0 %vm31_vm1, %v30_v27  ;;  %375 = vmatprep.subr.mxu1 %v403_v3 }
  0x21   :  { %376 = vmatpush3.msra.mxu1 %v121_v28 }
  0xd8   :  { %v107_v29 = vpop.f32.mrf.mxu0 }
  0xd9   :  { %378 = vmatmul.mubr.msk.f32.vlgmr.msra.gmra.mxu1 %vm136_vm2, %v107_v29 }
  0xda   :  { %v340_v30 = vpop.f32.mrf.mxu0  ;;  %380 = vmatprep.mubr.msk.f32.mxu1 %vm404_vm0, %v403_v3 }
  0xdc   :  { %v112_v31 = vpop.f32.mrf.mxu0 }
  0xdd   :  { %381 = vmatmul.mubr.msk.f32.gmra.mxu1 %vm136_vm2, %v112_v31 }
  0xde   :  { %v343_v32 = vpop.f32.mrf.mxu0  ;;  %383 = vmatprep.mubr.msk.f32.mxu1 %vm404_vm0, %v403_v3 }
  0xe0   :  { %v117_v33 = vpop.f32.mrf.mxu0 }
  0xe1   :  { %384 = vmatmul.mubr.msk.f32.gmra.mxu1 %vm136_vm2, %v117_v33 }
  0xe2   :  { %v346_v34 = vpop.f32.mrf.mxu0 }
 0x199   :  { %v212_v35 = vpop.f32.mrf.mxu1 }
 0x19a   :  { %v226_v36 = vmul.f32 %v212_v35, %v212_v35  ;;  %v228_v45 = vrot.slane %v212_v35, 4 }
 0x19b   :  { %v379_v37 = vpop.f32.mrf.mxu1 }
 0x19c   :  { %v239_v38 = vrot.slane %v226_v36, 4  ;;  %v230_v51 = vmul.f32 %v228_v45, %v212_v35 }
 0x19d   :  { %v217_v39 = vpop.f32.mrf.mxu1 }
 0x19e   :  { %v231_v40 = vsub.f32 %v217_v39, %v226_v36  ;;  %v241_v42 = vadd.f32 %v239_v38, %v226_v36  ;;  %v233_v54 = vmul.f32 2.0, %v230_v51 }
 0x19f   :  { %v382_v41 = vpop.f32.mrf.mxu1 }
 0x1a0   :  { %v244_v43 = vrot.slane %v231_v40, 4  ;;  %v242_v48 = vadd.f32 0.0001, %v241_v42  ;;  %v234_v56 = vadd.f32 0.0001, %v233_v54 }
 0x1a1   :  { %v222_v44 = vpop.f32.mrf.mxu1 }
 0x1a2   :  { %v246_v46 = vadd.f32 %v244_v43, %v231_v40  ;;  %v232_v52 = vsub.f32 %v222_v44, %v230_v51 }
 0x1a3   :  { %v385_v47 = vpop.f32.mrf.mxu1 }
 0x1a4   :  { %v247_v49 = vadd.f32 0.0009, %v246_v46  ;;  %v235_v53 = vmul.f32 2.0, %v232_v52 }
 0x1a6   :  { %v248_v50 = vmul.f32 %v247_v49, %v242_v48  ;;  %v236_v55 = vadd.f32 0.0009, %v235_v53 }
 0x1a8   :  { %391 = vrcp.f32 %v248_v50  ;;  %v237_v57 = vmul.f32 %v236_v55, %v234_v56 }
 0x1b5   :  { %v392_v58 = vpop.eup %391 }
 0x1b6   :  { %v250_v59 = vmul.f32 %v392_v58, %v237_v57 }
 0x1b8   :  { %v252_v60 = vsel %vm251_vm3, %v250_v59, 0.0 }
 0x1b9   :  { %253 = vadd.xlane.f32.xlu0 %v252_v60 }
 0x242   :  { %v254_v61 = vpop.xlane.xlu0 %253 }
 0x243   :  { %v255_v62 = vrot.slane %v254_v61, 4 }
 0x245   :  { %v256_v63 = vadd.f32 %v255_v62, %v254_v61 }
 0x247   :  { %v257_v0 = vrot.slane %v256_v63, 2 }
 0x249   :  { %v258_v1 = vadd.f32 %v257_v0, %v256_v63 }
 0x24b   :  { %v259_v2 = vrot.slane %v258_v1, 1 }
 0x24d   :  { %v260_v3 = vadd.f32 %v259_v2, %v258_v1 }
 0x24f   :  { %386 = vpush %v260_v3 }
 0x280   :  { %s387_s2 = spop %386 }
 0x281   :  { %s264_s3 = smul.f32 0.008333334, %s387_s2 }
 0x283   :  { %s265_s29 = ssub.f32 1.0, %s264_s3 }
 0x285   :  { %267 = sst [smem:[#allocation2]] %s265_s29 }
 0x286   :  { %275 = dma.smem_to_hbm %s405_s30, 16, %s544_s4, [#allocation3]  }
 0x287   :  { %401 = dma.done.wait [#allocation3], 16  }
 0x288   :  { %402 = vsyncadd [#allocation3], 4294967280 }
 0x289   :  { %279 = sfence }
 0x28a   :  { %280 = vsyncpa [#allocation3], 1 }

</bundles_post_ra>
